<compile_context>
chip_gen: v7x
topology: tpu7x:2x2x1
jax: 0.10.0
libtpu: 0.0.40
codegen_flags: <defaults>
</compile_context>

<pallas_src>
import functools

import jax
import jax.numpy as jnp
from jax import lax
from jax.experimental import pallas as pl
from jax.experimental.pallas import tpu as pltpu


@functools.lru_cache(maxsize=1)
def _roll_matches_numpy() -> bool:
    """One-time hardware probe: does pltpu.roll follow np.roll's convention
    (result[i] = x[(i - shift) mod n])?  Used to pick rotation amounts in the
    bitonic-sort kernel so partner selection is correct either way."""
    def probe(o_ref):
        idx = lax.broadcasted_iota(jnp.int32, (8, 128), 1)
        o_ref[...] = pltpu.roll(idx, 1, axis=1)

    out = pl.pallas_call(
        probe, out_shape=jax.ShapeDtypeStruct((8, 128), jnp.int32)
    )()
    return int(out[0, 0]) == 127


def _topk_iter_kernel(x_ref, o_ref, *, k: int, T: int, compute_dtype):
    """Small-k path: k unrolled rounds of row-max + first-occurrence knock-out.
    Each round writes its (TR, 1) max column directly into the output block."""
    x = x_ref[...].astype(compute_dtype)                    # (TR, T)
    col = lax.broadcasted_iota(jnp.int32, (1, T), 1)        # (1, T)
    neg_inf = jnp.array(-jnp.inf, compute_dtype)

    for i in range(k):                                       # fully unrolled
        m = jnp.max(x, axis=-1, keepdims=True)               # (TR, 1)
        o_ref[:, pl.ds(i, 1)] = m.astype(o_ref.dtype)        # direct column write
        if i + 1 < k:
            first = jnp.min(jnp.where(x == m, col, T), axis=-1, keepdims=True)
            x = jnp.where(col == first, neg_inf, x)          # knock out first max


def _topk_sort_kernel(x_ref, o_ref, *, k: int, T: int, P: int,
                      compute_dtype, roll_np_conv: bool):
    """Large-k path: descending bitonic sort along the lane axis, take first k.

    Compare-exchange partner a[i ^ j] is fetched with two lane rotations and a
    bit-mask select; direction masks come from a single (1, P) iota."""
    x = x_ref[...].astype(compute_dtype)                     # (TR, T)
    TR = x.shape[0]
    neg_inf = jnp.array(-jnp.inf, compute_dtype)
    if P != T:                                               # pad lanes to pow2
        pad = jnp.full((TR, P - T), neg_inf, compute_dtype)
        x = jnp.concatenate([x, pad], axis=-1)               # (TR, P)

    lane = lax.broadcasted_iota(jnp.int32, (1, P), 1)        # (1, P)

    span = 2
    while span <= P:
        j = span // 2
        while j >= 1:
            lower = (lane & j) == 0                          # low index of its pair
            desc = (lane & span) == 0                        # block sorts descending
            take_max = lower == desc
            # rolled_fwd[i] = x[i + j],  rolled_bwd[i] = x[i - j]   (mod P)
            s_fwd = (P - j) if roll_np_conv else j
            s_bwd = j if roll_np_conv else (P - j)
            fwd = pltpu.roll(x, s_fwd, axis=1)
            bwd = pltpu.roll(x, s_bwd, axis=1)
            partner = jnp.where(lower, fwd, bwd)             # x[i ^ j]
            x = jnp.where(take_max, jnp.maximum(x, partner),
                          jnp.minimum(x, partner))
            j //= 2
        span *= 2

    o_ref[...] = x[:, :k].astype(o_ref.dtype)                # single lane-slice store


def kmax_pool(x: jax.Array, k) -> jax.Array:
    """Pallas implementation of KMaxPool.forward.

    x: (B, C, T).  Returns (B, C, k) top-k values along the last axis,
    sorted descending (same values as torch.topk(..., sorted=True)[0])."""
    B, C, T = x.shape
    if isinstance(k, str):
        assert k == "half", k
        k = T // 2
    k = int(k)
    assert 1 <= k <= T

    R = B * C
    x2 = x.reshape(R, T)

    # --- chip-dependent choices -------------------------------------------
    try:
        kind = jax.devices()[0].device_kind.lower()
    except Exception:  # pragma: no cover
        kind = ""
    is_v5 = "v5" in kind                      # v5e: no bf16 VPU, conservative VMEM
    is_v7 = ("v7" in kind) or ("tpu7" in kind)  # v7x: 64 MiB VMEM, 2 TCs/chip

    compute_dtype = (
        jnp.bfloat16 if (x.dtype == jnp.bfloat16 and not is_v5) else jnp.float32
    )
    in_itemsize = jnp.dtype(x.dtype).itemsize
    comp_itemsize = jnp.dtype(compute_dtype).itemsize
    itemsize = max(in_itemsize, comp_itemsize)

    # Algorithm choice: bitonic sort for large k (and k == 'half') once the
    # lane width is at least a full vreg; knock-out otherwise.
    P = pl.next_power_of_2(T)
    use_sort = (P >= 128) and ((k >= 64) or (2 * k >= T))
    T_comp = P if use_sort else T

    # --- row tiling ---------------------------------------------------------
    sub = {1: 32, 2: 16}.get(in_itemsize, 8)      # sublane tile of the input dtype
    budget = (2 if is_v5 else (4 if is_v7 else 8)) << 20   # per-block compute bytes
    tr = (budget // (T_comp * itemsize)) // sub * sub
    tr = max(sub, min(4096, tr))
    if use_sort:
        tr = min(tr, 512)   # bound statically-unrolled sort program size

    if R <= tr:
        TR = R                                  # full-extent block
    else:
        steps = pl.cdiv(R, tr)
        if is_v7 and steps % 2:
            steps += 1                          # even split across the 2 TensorCores
        per = pl.cdiv(R, steps)
        TR = ((per + sub - 1) // sub) * sub     # balanced, sublane-aligned blocks
    grid = (pl.cdiv(R, TR),)

    # --- VMEM limit from the actual footprint (double-buffered input, compute
    #     copy + sort temporaries, output block) + headroom --------------------
    in_block = TR * T * in_itemsize
    comp_block = TR * T_comp * comp_itemsize
    out_block = TR * k * itemsize
    need = 3 * in_block + 4 * comp_block + 3 * out_block + (4 << 20)
    vmem_cap = (56 << 20) if is_v7 else (110 << 20)
    vmem_limit = int(min(max(need, 32 << 20), vmem_cap))

    if use_sort:
        kernel = functools.partial(
            _topk_sort_kernel, k=k, T=T, P=P, compute_dtype=compute_dtype,
            roll_np_conv=_roll_matches_numpy())
    else:
        kernel = functools.partial(
            _topk_iter_kernel, k=k, T=T, compute_dtype=compute_dtype)

    # v7x small-k is HBM-read-bound with tiny compute: keep more reads in flight.
    spec_kwargs = {}
    if is_v7 and (not use_sort) and k <= 16:
        spec_kwargs = dict(pipeline_mode=pl.Buffered(3))
    in_spec = pl.BlockSpec((TR, T), lambda i: (i, 0), **spec_kwargs)

    out2 = pl.pallas_call(
        kernel,
        out_shape=jax.ShapeDtypeStruct((R, k), x.dtype),
        grid=grid,
        in_specs=[in_spec],
        out_specs=pl.BlockSpec((TR, k), lambda i: (i, 0)),
        compiler_params=pltpu.CompilerParams(
            dimension_semantics=("parallel",),   # megacore sharding on v7x
            vmem_limit_bytes=vmem_limit,
        ),
    )(x2)
    return out2.reshape(B, C, k)


if __name__ == "__main__":
    key = jax.random.PRNGKey(0)
    k0, k1, k2, k3 = jax.random.split(key, 4)

    # 1) small k, small T (unrolled knock-out path).
    x = jax.random.normal(k0, (2, 4, 16), dtype=jnp.float32)
    out = jax.block_until_ready(kmax_pool(x, 3))
    ref, _ = lax.top_k(x, 3)
    assert out.shape == (2, 4, 3), out.shape
    assert jnp.allclose(out, ref, atol=1e-6)

    # 2) k == "half" at small T (knock-out path, lane width < 128).
    out = jax.block_until_ready(kmax_pool(x, "half"))
    ref, _ = lax.top_k(x, 8)
    assert out.shape == (2, 4, 8), out.shape
    assert jnp.allclose(out, ref, atol=1e-6)

    # 3) k == "half" at T=256 (bitonic-sort path, power-of-two T).
    x3 = jax.random.normal(k1, (2, 4, 256), dtype=jnp.float32)
    out = jax.block_until_ready(kmax_pool(x3, "half"))
    ref, _ = lax.top_k(x3, 128)
    assert out.shape == (2, 4, 128), out.shape
    assert jnp.allclose(out, ref, atol=1e-6)

    # 4) large k at non-power-of-two T (sort path with -inf lane padding).
    x4 = jax.random.normal(k2, (2, 4, 160), dtype=jnp.float32)
    out = jax.block_until_ready(kmax_pool(x4, 80))
    ref, _ = lax.top_k(x4, 80)
    assert out.shape == (2, 4, 80), out.shape
    assert jnp.allclose(out, ref, atol=1e-6)

    # 5) bf16 input, small k (bf16 compute on v6e/v7x, f32 upcast on v5e).
    x5 = jax.random.normal(k3, (2, 4, 128), dtype=jnp.float32).astype(jnp.bfloat16)
    out = jax.block_until_ready(kmax_pool(x5, 4))
    ref, _ = lax.top_k(x5.astype(jnp.float32), 4)
    assert out.shape == (2, 4, 4), out.shape
    assert jnp.allclose(out.astype(jnp.float32), ref)

    print("KERNEL_OK")
</pallas_src>

<mosaic_0001>
module attributes {stable_mosaic.version = 11 : i64} {
  func.func @_topk_iter_kernel(%arg0: i32, %arg1: memref<8x16xf32, #tpu.memory_space<vmem>>, %arg2: memref<8x3xf32, #tpu.memory_space<vmem>>) attributes {dimension_semantics = [#tpu.dimension_semantics<parallel>], iteration_bounds = array<i64: 1>, scalar_prefetch = 0 : i64, scratch_operands = 0 : i64, tpu.core_type = #tpu.core_type<tc>, window_params = [{transform_indices = @transform_0, window_bounds = array<i64: 8, 16>}, {transform_indices = @transform_1, window_bounds = array<i64: 8, 3>}]} {
    %c0 = arith.constant 0 : index
    %c0_0 = arith.constant 0 : index
    %0 = vector.load %arg1[%c0, %c0_0] : memref<8x16xf32, #tpu.memory_space<vmem>>, vector<8x16xf32>
    %1 = tpu.iota {dimensions = array<i32: 1>} : vector<1x16xi32>
    %cst = arith.constant dense<0xFF800000> : vector<8xf32>
    %2 = vector.multi_reduction <maximumf>, %0, %cst [1] : vector<8x16xf32> to vector<8xf32>
    %3 = vector.shape_cast %2 : vector<8xf32> to vector<8x1xf32>
    %c0_1 = arith.constant 0 : index
    %c0_2 = arith.constant 0 : index
    %4 = vector.load %arg2[%c0_1, %c0_2] : memref<8x3xf32, #tpu.memory_space<vmem>>, vector<8x1xf32>
    tpu.vector_store %arg2[%c0_1, %c0_2], %3 {strides = array<i32>} : memref<8x3xf32, #tpu.memory_space<vmem>>, vector<8x1xf32>,
    %5 = vector.broadcast %3 : vector<8x1xf32> to vector<8x16xf32>
    %6 = arith.cmpf oeq, %0, %5 : vector<8x16xf32>
    %c16_i32 = arith.constant 16 : i32
    %7 = vector.shape_cast %1 : vector<1x16xi32> to vector<1x16xi32>
    %8 = vector.broadcast %7 : vector<1x16xi32> to vector<8x16xi32>
    %9 = vector.broadcast %c16_i32 : i32 to vector<8x16xi32>
    %10 = arith.select %6, %8, %9 : vector<8x16xi1>, vector<8x16xi32>
    %cst_3 = arith.constant dense<2147483647> : vector<8xi32>
    %11 = vector.multi_reduction <minsi>, %10, %cst_3 [1] : vector<8x16xi32> to vector<8xi32>
    %12 = vector.shape_cast %11 : vector<8xi32> to vector<8x1xi32>
    %13 = vector.broadcast %1 : vector<1x16xi32> to vector<8x16xi32>
    %14 = vector.broadcast %12 : vector<8x1xi32> to vector<8x16xi32>
    %15 = arith.cmpi eq, %13, %14 : vector<8x16xi32>
    %cst_4 = arith.constant 0xFF800000 : f32
    %16 = vector.broadcast %cst_4 : f32 to vector<8x16xf32>
    %17 = arith.select %15, %16, %0 : vector<8x16xi1>, vector<8x16xf32>
    %cst_5 = arith.constant dense<0xFF800000> : vector<8xf32>
    %18 = vector.multi_reduction <maximumf>, %17, %cst_5 [1] : vector<8x16xf32> to vector<8xf32>
    %19 = vector.shape_cast %18 : vector<8xf32> to vector<8x1xf32>
    %c0_6 = arith.constant 0 : index
    %c1 = arith.constant 1 : index
    %20 = vector.load %arg2[%c0_6, %c1] : memref<8x3xf32, #tpu.memory_space<vmem>>, vector<8x1xf32>
    tpu.vector_store %arg2[%c0_6, %c1], %19 {strides = array<i32>} : memref<8x3xf32, #tpu.memory_space<vmem>>, vector<8x1xf32>,
    %21 = vector.broadcast %19 : vector<8x1xf32> to vector<8x16xf32>
    %22 = arith.cmpf oeq, %17, %21 : vector<8x16xf32>
    %c16_i32_7 = arith.constant 16 : i32
    %23 = vector.shape_cast %1 : vector<1x16xi32> to vector<1x16xi32>
    %24 = vector.broadcast %23 : vector<1x16xi32> to vector<8x16xi32>
    %25 = vector.broadcast %c16_i32_7 : i32 to vector<8x16xi32>
    %26 = arith.select %22, %24, %25 : vector<8x16xi1>, vector<8x16xi32>
    %cst_8 = arith.constant dense<2147483647> : vector<8xi32>
    %27 = vector.multi_reduction <minsi>, %26, %cst_8 [1] : vector<8x16xi32> to vector<8xi32>
    %28 = vector.shape_cast %27 : vector<8xi32> to vector<8x1xi32>
    %29 = vector.broadcast %1 : vector<1x16xi32> to vector<8x16xi32>
    %30 = vector.broadcast %28 : vector<8x1xi32> to vector<8x16xi32>
    %31 = arith.cmpi eq, %29, %30 : vector<8x16xi32>
    %cst_9 = arith.constant 0xFF800000 : f32
    %32 = vector.broadcast %cst_9 : f32 to vector<8x16xf32>
    %33 = arith.select %31, %32, %17 : vector<8x16xi1>, vector<8x16xf32>
    %cst_10 = arith.constant dense<0xFF800000> : vector<8xf32>
    %34 = vector.multi_reduction <maximumf>, %33, %cst_10 [1] : vector<8x16xf32> to vector<8xf32>
    %35 = vector.shape_cast %34 : vector<8xf32> to vector<8x1xf32>
    %c0_11 = arith.constant 0 : index
    %c2 = arith.constant 2 : index
    %36 = vector.load %arg2[%c0_11, %c2] : memref<8x3xf32, #tpu.memory_space<vmem>>, vector<8x1xf32>
    tpu.vector_store %arg2[%c0_11, %c2], %35 {strides = array<i32>} : memref<8x3xf32, #tpu.memory_space<vmem>>, vector<8x1xf32>,
    return
  }
  func.func @transform_0(%arg0: i32) -> (i32, i32) {
    %c0_i32 = arith.constant 0 : i32
    %c0_i32_0 = arith.constant 0 : i32
    return %arg0, %c0_i32 : i32, i32
  }
  func.func @transform_1(%arg0: i32) -> (i32, i32) {
    %c0_i32 = arith.constant 0 : i32
    %c0_i32_0 = arith.constant 0 : i32
    return %arg0, %c0_i32 : i32, i32
  }
}

</mosaic_0001>

<bundles_post_ra>
// kernel: tpu_custom_call.1
= control target key start
LH: loop header
LB: loop body
LE: loop exit
PB: predicated region body
PF: predicated region fallthrough
CT: control target
= control target key end

     0   :  { %6 = vsyncpa [#allocation3], 0  ;;  %s107_s6 = smov [#allocation2]   ;;  %s144_s0 = inlined_call_operand.hbm [shape: f32[8,16], index: 0, kind: input, shape index: {}]   ;;  %s145_s1 = inlined_call_operand.vmem [shape: f32[8,3], index: 1, kind: output, shape index: {}]  }
   0x1   :  { %s13_s7 = sshll.u32 %s107_s6, 4  ;;  %s83_s10 = scalar_lea.hbm %s144_s0, 128  ;;  %s14_s7 = int_to_ptr.vmem [resolvable:$true] %s13_s7 }
   0x2   :  { %p84_p0 = scmp.ne.s32.totalorder %s144_s0, %s83_s10  ;;  %p87_p1 = scmp.lt.u32.totalorder %s83_s10, %s144_s0 }
   0x4   :  { %p89_p2 = pnand %p87_p1, %p84_p0 }
   0x6   :  { %92 = shalt.err (!%p89_p2)
}
   0x7   :  { %s93_s15 = scalar_lea.vmem %s14_s7, 128  ;;  %p98_p4 = scmp.lt.s32.totalorder %s14_s7, %s14_s7 }
   0x8   :  { %p94_p3 = scmp.ne.s32.totalorder %s14_s7, %s93_s15  ;;  %p99_p5 = scmp.lt.s32.totalorder %s93_s15, %s93_s15 }
   0xa   :  { %p100_p6 = por %p99_p5, %p98_p4 }
   0xc   :  { %p101_p7 = pnand %p100_p6, %p94_p3 }
   0xe   :  { %104 = shalt.err (!%p101_p7)
}
   0xf   :  { %16 = dma.hbm_to_vmem [thread:$0]  %s144_s0, 128, %s14_s7, [#allocation3]  }
  0x10   :  { %105 = dma.done.wait [#allocation3], 128  }
  0x11   :  { %106 = vsyncadd [#allocation3], 4294967168  ;;  %vm23_vm0 = vcmask 130048   ;;  %v20_v0 = vld [vmem:[#allocation2] sm:$0xff]  ;;  %v21_v2 = vlaneseq  ;;  %vm27_vm1 = vcmask 7168   ;;  %vm51_vm5 = vcmask 15368  }
  0x12   :  { %v24_v1 = vsel %vm23_vm0, %v20_v0, -inf  ;;  %vm75_vm9 = vcmask 23568  }
  0x13   :  { %25 = vmax.xlane.f32.xlu0 %v24_v1  ;;  %v22_v3 = vand.u32 127, %v21_v2 }
  0xa0   :  { %v26_v4 = vpop.xlane.xlu0 %25 }
  0xa1   :  { %28 = vst.msk [vmem:[%s145_s1] sm:$0xff] %vm27_vm1, %v26_v4  ;;  %vm29_vm2 = vcmp.eq.f32.partialorder %v20_v0, %v26_v4 }
  0xa2   :  { %v30_v5 = vsel %vm29_vm2, %v22_v3, 16 }
  0xa3   :  { %v31_v6 = vsel %vm23_vm0, %v30_v5, 2147483647 }
  0xa4   :  { %v33_v7 = vshra.s32 %v31_v6, 16  ;;  %v32_v9 = vand.u32 65535, %v31_v6 }
  0xa6   :  { %v35_v8 = vcvt.s32.f32 %v33_v7  ;;  %v34_v11 = vcvt.s32.f32 %v32_v9 }
  0xa8   :  { %36 = vmin.xlane.f32.xlu0 %v35_v8 }
 0x135   :  { %v37_v10 = vpop.xlane.xlu0 %36 }
 0x136   :  { %vm38_vm3 = vcmp.eq.f32.partialorder %v35_v8, %v37_v10  ;;  %v43_v13 = vcvt.f32.s32 %v37_v10 }
 0x137   :  { %v39_v12 = vsel %vm38_vm3, %v34_v11, inf }
 0x138   :  { %40 = vmin.xlane.f32.xlu1 %v39_v12  ;;  %v44_v15 = vshll.u32 %v43_v13, 16 }
 0x1c5   :  { %v41_v14 = vpop.xlane.xlu1 %40 }
 0x1c6   :  { %v42_v16 = vcvt.f32.s32 %v41_v14 }
 0x1c8   :  { %v45_v17 = vadd.s32 %v44_v15, %v42_v16 }
 0x1ca   :  { %vm46_vm4 = vcmp.eq.s32.totalorder %v22_v3, %v45_v17 }
 0x1cb   :  { %v47_v18 = vsel %vm46_vm4, -inf, %v20_v0 }
 0x1cc   :  { %v48_v19 = vsel %vm23_vm0, %v47_v18, -inf }
 0x1cd   :  { %49 = vmax.xlane.f32.xlu1 %v48_v19 }
 0x25a   :  { %v50_v20 = vpop.xlane.xlu1 %49 }
 0x25b   :  { %52 = vst.msk [vmem:[%s145_s1] sm:$0xff] %vm51_vm5, %v50_v20  ;;  %vm53_vm6 = vcmp.eq.f32.partialorder %v47_v18, %v50_v20 }
 0x25c   :  { %v54_v21 = vsel %vm53_vm6, %v22_v3, 16 }
 0x25d   :  { %v55_v22 = vsel %vm23_vm0, %v54_v21, 2147483647 }
 0x25e   :  { %v57_v23 = vshra.s32 %v55_v22, 16  ;;  %v56_v25 = vand.u32 65535, %v55_v22 }
 0x260   :  { %v59_v24 = vcvt.s32.f32 %v57_v23  ;;  %v58_v27 = vcvt.s32.f32 %v56_v25 }
 0x262   :  { %60 = vmin.xlane.f32.xlu0 %v59_v24 }
 0x2ef   :  { %v61_v26 = vpop.xlane.xlu0 %60 }
 0x2f0   :  { %vm62_vm7 = vcmp.eq.f32.partialorder %v59_v24, %v61_v26  ;;  %v67_v29 = vcvt.f32.s32 %v61_v26 }
 0x2f1   :  { %v63_v28 = vsel %vm62_vm7, %v58_v27, inf }
 0x2f2   :  { %64 = vmin.xlane.f32.xlu1 %v63_v28  ;;  %v68_v31 = vshll.u32 %v67_v29, 16 }
 0x37f   :  { %v65_v30 = vpop.xlane.xlu1 %64 }
 0x380   :  { %v66_v32 = vcvt.f32.s32 %v65_v30 }
 0x382   :  { %v69_v33 = vadd.s32 %v68_v31, %v66_v32 }
 0x384   :  { %vm70_vm8 = vcmp.eq.s32.totalorder %v22_v3, %v69_v33 }
 0x385   :  { %v71_v34 = vsel %vm70_vm8, -inf, %v47_v18 }
 0x386   :  { %v72_v35 = vsel %vm23_vm0, %v71_v34, -inf }
 0x387   :  { %73 = vmax.xlane.f32.xlu0 %v72_v35 }
 0x414   :  { %v74_v36 = vpop.xlane.xlu0 %73 }
 0x415   :  { %76 = vst.msk [vmem:[%s145_s1] sm:$0xff] %vm75_vm9, %v74_v36 }
 0x416   :  { %81 = vsyncpa [#allocation3], 1 }

</bundles_post_ra>
